<compile_context>
chip_gen: v7x
topology: tpu7x:2x2x1
jax: 0.10.0
libtpu: 0.0.40
codegen_flags: <defaults>
</compile_context>

<pallas_src>
import jax
import jax.numpy as jnp
from jax.experimental import pallas as pl
from jax.experimental.pallas import tpu as pltpu


def _make_focal_kernel(gamma: float, n_true: int, tn: int, tiles_per_split: int):
    def kernel(x_ref, tgt_ref, at_ref, o_ref):
        # x_ref:   (TN, C)   logits tile (native dtype, upcast in-kernel)
        # tgt_ref: (TN, 1)   i32 targets tile
        # at_ref:  (TN, 1)   f32 per-row alpha[target] (gathered in wrapper)
        # o_ref:   (1, 1, 1) f32 per-core running partial sum
        s = pl.program_id(0)          # core-split index ("parallel")
        i = pl.program_id(1)          # batch-tile index  ("arbitrary" reduction)

        @pl.when(i == 0)
        def _init():
            o_ref[...] = jnp.zeros_like(o_ref)

        x = x_ref[...].astype(jnp.float32)                     # (TN, C)
        tn_, c_ = x.shape

        # Log-sum-exp: single exp per element, no softmax divide, no log(0).
        m = jnp.max(x, axis=1, keepdims=True)                  # (TN, 1)
        xm = x - m                                              # reused below
        denom = jnp.sum(jnp.exp(xm), axis=1, keepdims=True)    # (TN, 1)

        # One-hot gather of the target logit (on the already-centered xm).
        col_ids = jax.lax.broadcasted_iota(jnp.int32, (tn_, c_), 1)
        onehot = (col_ids == tgt_ref[...]).astype(jnp.float32)  # (TN, C)
        xt_m = jnp.sum(xm * onehot, axis=1, keepdims=True)      # x_t - m

        log_p = xt_m - jnp.log(denom)                           # log softmax[target]
        probs = jnp.exp(log_p)
        one_m = jnp.maximum(1.0 - probs, 0.0)
        if gamma == 2.0:
            focal = one_m * one_m
        elif gamma == 1.0:
            focal = one_m
        elif gamma == 0.0:
            focal = jnp.ones_like(one_m)
        else:
            focal = jnp.power(one_m, jnp.float32(gamma))

        per_row = -at_ref[...] * focal * log_p                  # (TN, 1)

        # Mask rows past the true batch size (ragged last tile and clamped
        # duplicate tiles). jnp.where (not a multiply) so garbage/NaN rows
        # from unspecified out-of-bounds reads cannot poison the sum.
        global_tile = s * tiles_per_split + i
        row_ids = jax.lax.broadcasted_iota(jnp.int32, (tn_, 1), 0) + global_tile * tn
        per_row = jnp.where(row_ids < n_true, per_row, 0.0)

        o_ref[...] += jnp.sum(per_row, axis=0, keepdims=True).reshape(1, 1, 1)

    return kernel


def focal_loss2(inputs, targets, alpha=None, gamma=2.0, size_average=True,
                max_tile_rows=None):
    """inputs: (N, C) logits; targets: (N,) int labels. Returns scalar f32 loss.

    max_tile_rows: optional cap on the batch-tile height (testing / tuning).
    """
    n, c = inputs.shape
    if alpha is None:
        alpha = jnp.ones((c,), dtype=jnp.float32)          # torch.ones(class_num, 1)
    alpha = jnp.asarray(alpha, dtype=jnp.float32).reshape(-1)

    tgt = targets.astype(jnp.int32)
    tgt2d = tgt.reshape(n, 1)
    alpha_t = jnp.take(alpha, tgt).reshape(n, 1)            # per-row alpha gather (N elems)

    itemsize = jnp.dtype(inputs.dtype).itemsize
    row_mult = max(8, 32 // itemsize)                       # 8 f32, 16 bf16/fp16

    # VMEM budget: double-buffered streamed inputs + ~5 full-width f32 in-kernel
    # temporaries (f32 upcast, xm, exp, one-hot, products). Keep total ~20 MiB
    # so it fits comfortably under a 40 MiB scoped limit (v7x has 64 MiB VMEM).
    n_buf = 2
    per_row_bytes = n_buf * (c * itemsize + 8) + 5 * c * 4
    budget = 20 * 1024 * 1024
    tn = max(row_mult, (budget // per_row_bytes) // row_mult * row_mult)
    tn = min(tn, 2048)
    tn = min(tn, -(-n // row_mult) * row_mult)              # don't over-tile tiny N
    if max_tile_rows is not None:
        tn = min(tn, max(row_mult, (max_tile_rows // row_mult) * row_mult))
    tn = max(tn, row_mult)

    num_tiles = -(-n // tn)
    n_split = 2 if num_tiles >= 2 else 1                    # feed both v7x TensorCores
    tpc = -(-num_tiles // n_split)                          # tiles per split

    kernel = _make_focal_kernel(float(gamma), int(n), int(tn), int(tpc))

    def tile_map(s, i):
        # Clamp so the (possibly) over-allocated last split slot re-reads the
        # final real tile; its rows are fully masked in-kernel.
        return (jnp.minimum(s * tpc + i, num_tiles - 1), 0)

    partial = pl.pallas_call(
        kernel,
        out_shape=jax.ShapeDtypeStruct((n_split, 1, 1), jnp.float32),
        grid=(n_split, tpc),
        in_specs=[
            pl.BlockSpec((tn, c), tile_map),    # logits tile (full class axis, no pad)
            pl.BlockSpec((tn, 1), tile_map),    # targets tile
            pl.BlockSpec((tn, 1), tile_map),    # alpha[target] tile
        ],
        out_specs=pl.BlockSpec((1, 1, 1), lambda s, i: (s, 0, 0)),  # per-core partial
        compiler_params=pltpu.CompilerParams(
            dimension_semantics=("parallel", "arbitrary"),
            vmem_limit_bytes=40 * 1024 * 1024,
        ),
    )(inputs, tgt2d, alpha_t)

    loss = jnp.sum(partial)                                  # combine per-core partials
    if size_average:
        loss = loss / jnp.float32(n)
    return loss


def _focal_loss_ref(inputs, targets, alpha=None, gamma=2.0, size_average=True):
    n, c = inputs.shape
    if alpha is None:
        alpha = jnp.ones((c,), dtype=jnp.float32)
    alpha = jnp.asarray(alpha, dtype=jnp.float32).reshape(-1)
    logp = jax.nn.log_softmax(inputs.astype(jnp.float32), axis=1)
    log_pt = jnp.take_along_axis(logp, targets.reshape(-1, 1), axis=1)
    pt = jnp.exp(log_pt)
    alpha_t = alpha[targets].reshape(-1, 1)
    batch_loss = -alpha_t * jnp.power(1.0 - pt, gamma) * log_pt
    return jnp.mean(batch_loss) if size_average else jnp.sum(batch_loss)


if __name__ == "__main__":
    key = jax.random.PRNGKey(0)
    k1, k2, k3, k4, k5, k6, k7 = jax.random.split(key, 7)

    # Case 1: the module's natural toy shape — class_num=4, batch of 8.
    N1, C1 = 8, 4
    x1 = jax.random.normal(k1, (N1, C1), dtype=jnp.float32)
    t1 = jax.random.randint(k2, (N1,), 0, C1, dtype=jnp.int32)
    loss1 = focal_loss2(x1, t1, gamma=2.0)
    jax.block_until_ready(loss1)
    ref1 = _focal_loss_ref(x1, t1, gamma=2.0)
    assert jnp.allclose(loss1, ref1, rtol=1e-5, atol=1e-6), (loss1, ref1)

    # Case 2: ragged batch + custom alpha (single ragged tile, zero padding anywhere).
    N2, C2 = 37, 10
    x2 = jax.random.normal(k3, (N2, C2), dtype=jnp.float32) * 3.0
    t2 = jax.random.randint(k4, (N2,), 0, C2, dtype=jnp.int32)
    a2 = jax.random.uniform(k5, (C2,), dtype=jnp.float32) + 0.5
    loss2 = focal_loss2(x2, t2, alpha=a2, gamma=2.0)
    jax.block_until_ready(loss2)
    ref2 = _focal_loss_ref(x2, t2, alpha=a2, gamma=2.0)
    assert jnp.allclose(loss2, ref2, rtol=1e-5, atol=1e-6), (loss2, ref2)

    # Case 3: multi-tile + 2-way core split + clamped trailing tile + sum reduction.
    N3, C3 = 41, 8
    x3 = jax.random.normal(k6, (N3, C3), dtype=jnp.float32)
    t3 = jax.random.randint(k7, (N3,), 0, C3, dtype=jnp.int32)
    loss3 = focal_loss2(x3, t3, gamma=2.0, size_average=False, max_tile_rows=16)
    jax.block_until_ready(loss3)
    ref3 = _focal_loss_ref(x3, t3, gamma=2.0, size_average=False)
    assert jnp.allclose(loss3, ref3, rtol=1e-5, atol=1e-5), (loss3, ref3)

    print("KERNEL_OK")
</pallas_src>

<mosaic_0001>
module attributes {stable_mosaic.version = 11 : i64} {
  func.func @kernel(%arg0: i32, %arg1: i32, %arg2: memref<8x4xf32, #tpu.memory_space<vmem>>, %arg3: memref<8x1xi32, #tpu.memory_space<vmem>>, %arg4: memref<8x1xf32, #tpu.memory_space<vmem>>, %arg5: memref<1x1x1xf32, #tpu.memory_space<vmem>>) attributes {dimension_semantics = [#tpu.dimension_semantics<parallel>, #tpu.dimension_semantics<arbitrary>], iteration_bounds = array<i64: 1, 1>, scalar_prefetch = 0 : i64, scratch_operands = 0 : i64, tpu.core_type = #tpu.core_type<tc>, window_params = [{transform_indices = @transform_0, window_bounds = array<i64: 8, 4>}, {transform_indices = @transform_1, window_bounds = array<i64: 8, 1>}, {transform_indices = @transform_2, window_bounds = array<i64: 8, 1>}, {transform_indices = @transform_3, window_bounds = array<i64: 1, 1, 1>}]} {
    %c0_i32 = arith.constant 0 : i32
    %0 = arith.cmpi eq, %arg1, %c0_i32 : i32
    %1 = arith.extui %0 : i1 to i32
    %c0_i32_0 = arith.constant 0 : i32
    %2 = arith.cmpi ne, %1, %c0_i32_0 : i32
    scf.if %2 {
      %cst_20 = arith.constant 0.000000e+00 : f32
      %49 = vector.broadcast %cst_20 : f32 to vector<1x1x1xf32>
      %c0_21 = arith.constant 0 : index
      %c0_22 = arith.constant 0 : index
      %c0_23 = arith.constant 0 : index
      %50 = vector.load %arg5[%c0_21, %c0_22, %c0_23] : memref<1x1x1xf32, #tpu.memory_space<vmem>>, vector<1x1x1xf32>
      tpu.vector_store %arg5[%c0_21, %c0_22, %c0_23], %49 {strides = array<i32>} : memref<1x1x1xf32, #tpu.memory_space<vmem>>, vector<1x1x1xf32>,
    } else {
    }
    %c0 = arith.constant 0 : index
    %c0_1 = arith.constant 0 : index
    %3 = vector.load %arg2[%c0, %c0_1] : memref<8x4xf32, #tpu.memory_space<vmem>>, vector<8x4xf32>
    %cst = arith.constant dense<0xFF800000> : vector<8xf32>
    %4 = vector.multi_reduction <maximumf>, %3, %cst [1] : vector<8x4xf32> to vector<8xf32>
    %5 = vector.shape_cast %4 : vector<8xf32> to vector<8x1xf32>
    %6 = vector.broadcast %5 : vector<8x1xf32> to vector<8x4xf32>
    %7 = arith.subf %3, %6 : vector<8x4xf32>
    %8 = math.exp %7 : vector<8x4xf32>
    %cst_2 = arith.constant dense<0.000000e+00> : vector<8xf32>
    %9 = vector.multi_reduction <add>, %8, %cst_2 [1] : vector<8x4xf32> to vector<8xf32>
    %10 = vector.shape_cast %9 : vector<8xf32> to vector<8x1xf32>
    %11 = tpu.iota {dimensions = array<i32: 1>} : vector<8x4xi32>
    %c0_3 = arith.constant 0 : index
    %c0_4 = arith.constant 0 : index
    %12 = vector.load %arg3[%c0_3, %c0_4] : memref<8x1xi32, #tpu.memory_space<vmem>>, vector<8x1xi32>
    %13 = vector.broadcast %12 : vector<8x1xi32> to vector<8x4xi32>
    %14 = arith.cmpi eq, %11, %13 : vector<8x4xi32>
    %15 = arith.extui %14 : vector<8x4xi1> to vector<8x4xi32>
    %16 = arith.sitofp %15 : vector<8x4xi32> to vector<8x4xf32>
    %17 = arith.mulf %7, %16 : vector<8x4xf32>
    %cst_5 = arith.constant dense<0.000000e+00> : vector<8xf32>
    %18 = vector.multi_reduction <add>, %17, %cst_5 [1] : vector<8x4xf32> to vector<8xf32>
    %19 = vector.shape_cast %18 : vector<8xf32> to vector<8x1xf32>
    %20 = math.log %10 : vector<8x1xf32>
    %21 = arith.subf %19, %20 : vector<8x1xf32>
    %22 = math.exp %21 : vector<8x1xf32>
    %cst_6 = arith.constant 1.000000e+00 : f32
    %23 = vector.broadcast %cst_6 : f32 to vector<8x1xf32>
    %24 = arith.subf %23, %22 : vector<8x1xf32>
    %cst_7 = arith.constant 0.000000e+00 : f32
    %25 = vector.broadcast %cst_7 : f32 to vector<8x1xf32>
    %26 = arith.maximumf %24, %25 : vector<8x1xf32>
    %27 = arith.mulf %26, %26 : vector<8x1xf32>
    %c0_8 = arith.constant 0 : index
    %c0_9 = arith.constant 0 : index
    %28 = vector.load %arg4[%c0_8, %c0_9] : memref<8x1xf32, #tpu.memory_space<vmem>>, vector<8x1xf32>
    %cst_10 = arith.constant 0.000000e+00 : f32
    %29 = vector.broadcast %cst_10 : f32 to vector<8x1xf32>
    %30 = arith.subf %29, %28 : vector<8x1xf32>
    %31 = arith.mulf %30, %27 : vector<8x1xf32>
    %32 = arith.mulf %31, %21 : vector<8x1xf32>
    %c1_i32 = arith.constant 1 : i32
    %33 = arith.muli %arg0, %c1_i32 : i32
    %34 = arith.addi %33, %arg1 : i32
    %35 = tpu.iota {dimensions = array<i32: 0>} : vector<8x1xi32>
    %c8_i32 = arith.constant 8 : i32
    %36 = arith.muli %34, %c8_i32 : i32
    %37 = vector.broadcast %36 : i32 to vector<8x1xi32>
    %38 = arith.addi %35, %37 : vector<8x1xi32>
    %c8_i32_11 = arith.constant 8 : i32
    %39 = vector.broadcast %c8_i32_11 : i32 to vector<8x1xi32>
    %40 = arith.cmpi slt, %38, %39 : vector<8x1xi32>
    %cst_12 = arith.constant 0.000000e+00 : f32
    %41 = vector.broadcast %cst_12 : f32 to vector<8x1xf32>
    %42 = arith.select %40, %32, %41 : vector<8x1xi1>, vector<8x1xf32>
    %c0_13 = arith.constant 0 : index
    %c0_14 = arith.constant 0 : index
    %c0_15 = arith.constant 0 : index
    %43 = vector.load %arg5[%c0_13, %c0_14, %c0_15] : memref<1x1x1xf32, #tpu.memory_space<vmem>>, vector<1x1x1xf32>
    %cst_16 = arith.constant dense<0.000000e+00> : vector<1xf32>
    %44 = vector.multi_reduction <add>, %42, %cst_16 [0] : vector<8x1xf32> to vector<1xf32>
    %45 = vector.shape_cast %44 : vector<1xf32> to vector<1x1xf32>
    %46 = vector.shape_cast %45 : vector<1x1xf32> to vector<1x1x1xf32>
    %47 = arith.addf %43, %46 : vector<1x1x1xf32>
    %c0_17 = arith.constant 0 : index
    %c0_18 = arith.constant 0 : index
    %c0_19 = arith.constant 0 : index
    %48 = vector.load %arg5[%c0_17, %c0_18, %c0_19] : memref<1x1x1xf32, #tpu.memory_space<vmem>>, vector<1x1x1xf32>
    tpu.vector_store %arg5[%c0_17, %c0_18, %c0_19], %47 {strides = array<i32>} : memref<1x1x1xf32, #tpu.memory_space<vmem>>, vector<1x1x1xf32>,
    return
  }
  func.func @transform_0(%arg0: i32, %arg1: i32) -> (i32, i32) {
    %c1_i32 = arith.constant 1 : i32
    %0 = arith.muli %arg0, %c1_i32 : i32
    %1 = arith.addi %0, %arg1 : i32
    %c0_i32 = arith.constant 0 : i32
    %2 = arith.minsi %1, %c0_i32 : i32
    %c0_i32_0 = arith.constant 0 : i32
    %c0_i32_1 = arith.constant 0 : i32
    return %2, %c0_i32_0 : i32, i32
  }
  func.func @transform_1(%arg0: i32, %arg1: i32) -> (i32, i32) {
    %c1_i32 = arith.constant 1 : i32
    %0 = arith.muli %arg0, %c1_i32 : i32
    %1 = arith.addi %0, %arg1 : i32
    %c0_i32 = arith.constant 0 : i32
    %2 = arith.minsi %1, %c0_i32 : i32
    %c0_i32_0 = arith.constant 0 : i32
    %c0_i32_1 = arith.constant 0 : i32
    return %2, %c0_i32_0 : i32, i32
  }
  func.func @transform_2(%arg0: i32, %arg1: i32) -> (i32, i32) {
    %c1_i32 = arith.constant 1 : i32
    %0 = arith.muli %arg0, %c1_i32 : i32
    %1 = arith.addi %0, %arg1 : i32
    %c0_i32 = arith.constant 0 : i32
    %2 = arith.minsi %1, %c0_i32 : i32
    %c0_i32_0 = arith.constant 0 : i32
    %c0_i32_1 = arith.constant 0 : i32
    return %2, %c0_i32_0 : i32, i32
  }
  func.func @transform_3(%arg0: i32, %arg1: i32) -> (i32, i32, i32) {
    %c0_i32 = arith.constant 0 : i32
    %c0_i32_0 = arith.constant 0 : i32
    %c0_i32_1 = arith.constant 0 : i32
    return %arg0, %c0_i32, %c0_i32_0 : i32, i32, i32
  }
}

</mosaic_0001>

<bundles_post_ra>
// kernel: tpu_custom_call.1
= control target key start
LH: loop header
LB: loop body
LE: loop exit
PB: predicated region body
PF: predicated region fallthrough
CT: control target
= control target key end

     0   :  { %vm103_vm0 = vcmask 31744   ;;  %s274_s0 = inlined_call_operand.vmem [shape: f32[8,4], index: 0, kind: input, shape index: {}]   ;;  %s275_s1 = inlined_call_operand.vmem [shape: s32[8,1], index: 1, kind: input, shape index: {}]   ;;  %s276_s2 = inlined_call_operand.vmem [shape: f32[8,1], index: 2, kind: input, shape index: {}]   ;;  %s277_s3 = inlined_call_operand.hbm [shape: f32[1,1,1], index: 3, kind: output, shape index: {}]  }
   0x1   :  { %v102_v0 = vld [vmem:[%s274_s0] sm:$0xff] }
   0x2   :  { %8 = vsyncpa [#allocation3], 0  ;;  %v104_v1 = vsel %vm103_vm0, %v102_v0, -inf  ;;  %v225_v2 = vmov 0   ;;  %v115_v3 = vld [vmem:[%s275_s1] sm:$0xff]  ;;  %vm100_vm1 = vcmask 0   ;;  %v113_v7 = vlaneseq }
   0x3   :  { %194 = vset.pattern.permute.xlu0 %v225_v2  ;;  %v226_v4 = vmov 0.0   ;;  %v134_v23 = vld [vmem:[%s276_s2] sm:$0xff]  ;;  %vm147_vm3 = vcmask 7168   ;;  %s227_s16 = smov [#allocation2]  }
   0x4   :  { %105 = vmax.xlane.f32.xlu0 %v104_v1  ;;  %101 = vst.msk [vmem:[#allocation2] sm:$0x1] %vm100_vm1, %v226_v4  ;;  %v114_v9 = vand.u32 127, %v113_v7  ;;  %v135_v25 = vsub.f32 0.0, %v134_v23  ;;  %s164_s17 = sshll.u32 %s227_s16, 4  ;;  %s165_s17 = int_to_ptr.vmem [resolvable:$true] %s164_s17 }
   0x5   :  { %s201_s2 = scalar_lea.vmem %s165_s17, 16  ;;  %s205_s18 = scalar_lea.vmem %s165_s17, 32 }
   0x6   :  { %p202_p0 = scmp.ne.s32.totalorder %s165_s17, %s201_s2  ;;  %p206_p1 = scmp.lt.s32.totalorder %s165_s17, %s165_s17 }
   0x7   :  { %p207_p2 = scmp.lt.s32.totalorder %s205_s18, %s201_s2 }
   0x9   :  { %p208_p3 = por %p207_p2, %p206_p1 }
   0xb   :  { %v146_v36 = vld [vmem:[#allocation2] sm:$0x1]  ;;  %p209_p4 = pnand %p208_p3, %p202_p0 }
  0x1a   :  { %117 = vperm.xlu0 %194, %v115_v3  }
  0x91   :  { %v106_v5 = vpop.xlane.xlu0 %105 }
  0x92   :  { %v107_v6 = vsub.f32 %v102_v0, %v106_v5 }
  0x94   :  { %v108_v8 = vmul.f32 1.442695, %v107_v6 }
  0x96   :  { %195 = vpow2.f32 %v108_v8 }
  0x99   :  { %v118_v10 = vpop.permute.xlu0 %117 }
  0x9a   :  { %vm119_vm2 = vcmp.eq.s32.totalorder %v114_v9, %v118_v10 }
  0x9b   :  { %v190_v11 = vsel %vm119_vm2, 1.0, %v226_v4 }
  0x9c   :  { %v122_v14 = vmul.f32 %v190_v11, %v107_v6 }
  0x9e   :  { %v123_v15 = vsel %vm103_vm0, %v122_v14, 0.0 }
  0xa0   :  { %v196_v12 = vpop.eup %195 }
  0xa1   :  { %v110_v13 = vsel %vm103_vm0, %v196_v12, 0.0 }
  0xa2   :  { %111 = vadd.xlane.f32.xlu1 %v110_v13 }
  0xa6   :  { %124 = vadd.xlane.f32.xlu1 %v123_v15 }
 0x12f   :  { %v112_v16 = vpop.xlane.xlu1 %111 }
 0x130   :  { %197 = vlog2.f32 %v112_v16 }
 0x133   :  { %v125_v19 = vpop.xlane.xlu1 %124 }
 0x13a   :  { %v198_v17 = vpop.eup %197 }
 0x13b   :  { %v127_v18 = vmul.f32 0.6931472, %v198_v17 }
 0x13d   :  { %v128_v20 = vsub.f32 %v125_v19, %v127_v18 }
 0x13f   :  { %v129_v21 = vmul.f32 1.442695, %v128_v20 }
 0x141   :  { %199 = vpow2.f32 %v129_v21 }
 0x14b   :  { %v200_v22 = vpop.eup %199 }
 0x14c   :  { %v131_v24 = vsub.f32 1.0, %v200_v22 }
 0x14e   :  { %v132_v26 = vmax.f32 %v131_v24, 0.0 }
 0x150   :  { %v133_v27 = vmul.f32 %v132_v26, %v132_v26 }
 0x152   :  { %v136_v28 = vmul.f32 %v135_v25, %v133_v27 }
 0x154   :  { %v137_v29 = vmul.f32 %v136_v28, %v128_v20 }
 0x156   :  { %v148_v30 = vsel %vm147_vm3, %v137_v29, 0.0 }
 0x157   :  { %v149_v31 = vrot.slane %v148_v30, 4 }
 0x159   :  { %v150_v32 = vadd.f32 %v149_v31, %v148_v30 }
 0x15b   :  { %v151_v33 = vrot.slane %v150_v32, 2 }
 0x15d   :  { %v152_v34 = vadd.f32 %v151_v33, %v150_v32 }
 0x15f   :  { %v153_v35 = vrot.slane %v152_v34, 1 }
 0x161   :  { %v154_v37 = vadd.f32 %v153_v35, %v152_v34 }
 0x163   :  { %v155_v38 = vadd.f32 %v154_v37, %v146_v36 }
 0x165   :  { %157 = vst.msk [vmem:[#allocation2] sm:$0x1] %vm100_vm1, %v155_v38 }
 0x166   :  { %212 = shalt.err (!%p209_p4)
}
 0x167   :  { %s213_s21 = scalar_lea.hbm %s277_s3, 16 }
 0x168   :  { %p214_p5 = scmp.ne.s32.totalorder %s277_s3, %s213_s21  ;;  %p217_p6 = scmp.lt.u32.totalorder %s213_s21, %s277_s3 }
 0x16a   :  { %p219_p7 = pnand %p217_p6, %p214_p5 }
 0x16c   :  { %222 = shalt.err (!%p219_p7)
}
 0x16d   :  { %167 = dma.vmem_to_hbm [thread:$0]  %s165_s17, 16, %s277_s3, [#allocation3]  }
 0x16e   :  { %223 = dma.done.wait [#allocation3], 16  }
 0x16f   :  { %224 = vsyncadd [#allocation3], 4294967280 }
 0x170   :  { %171 = vsyncpa [#allocation3], 1 }

</bundles_post_ra>
